<compile_context>
chip_gen: v7x
topology: tpu7x:2x2x1
jax: 0.10.0
libtpu: 0.0.40
codegen_flags: <defaults>
</compile_context>

<pallas_src>
import jax
import jax.numpy as jnp
from jax import lax
from jax.experimental import pallas as pl
from jax.experimental.pallas import tpu as pltpu

EPS = 1e-4          # matches the module's eps=0.0001 default
LANE = 128
TILE_CAP = 512      # max tile edge (multiple of LANE); keeps v7x VMEM happy


def _round_up(x, m):
    return ((x + m - 1) // m) * m


def _pick_tile(dim_pad, cap=TILE_CAP):
    """Largest multiple of 128 that divides dim_pad and is <= cap."""
    best = LANE
    t = LANE
    while t <= min(dim_pad, cap):
        if dim_pad % t == 0:
            best = t
        t += LANE
    return best


def linear_bn_relu_kernel(x_ref, w_ref, o_ref, acc_ref):
    k = pl.program_id(1)

    @pl.when(k == 0)
    def _init():
        acc_ref[...] = jnp.zeros_like(acc_ref)

    # MXU hot path: [B, TK] @ [TK, TN] -> f32 accumulate.
    acc_ref[...] += jnp.dot(x_ref[...], w_ref[...],
                            preferred_element_type=jnp.float32)

    @pl.when(k == pl.num_programs(1) - 1)
    def _finalize():
        y = acc_ref[...]                                  # [B, TN] f32
        n = y.shape[0]
        inv_n = 1.0 / n
        # Two-pass mean/var (numerically safer than E[y^2] - E[y]^2).
        mean = jnp.sum(y, axis=0, keepdims=True) * inv_n
        diff = y - mean
        var = jnp.sum(diff * diff, axis=0, keepdims=True) * inv_n  # biased
        y_hat = diff * lax.rsqrt(var + EPS)               # rsqrt -> EUP slot
        o_ref[...] = jnp.maximum(y_hat, 0.0).astype(o_ref.dtype)


def prepare_weight(weight):
    """One-time (off the hot path): PyTorch [out, in] -> padded [in_pad, out_pad]."""
    out_f, in_f = weight.shape
    in_pad = _round_up(in_f, LANE)
    out_pad = _round_up(out_f, LANE)
    w_t = jnp.zeros((in_pad, out_pad), weight.dtype)
    w_t = w_t.at[:in_f, :out_f].set(weight.T)
    return w_t


def linear_bn_relu(x, w_prepared, out_features):
    """x: [B, in_features] f32; w_prepared: from prepare_weight()."""
    B, in_f = x.shape
    in_pad, out_pad = w_prepared.shape
    assert in_pad >= in_f and in_pad % LANE == 0 and out_pad % LANE == 0

    # Pad x along K (zeros contribute nothing to the matmul).  For real
    # workloads in_features is typically already 128-aligned and this is a
    # no-op.
    if in_pad != in_f:
        x = jnp.pad(x, ((0, 0), (0, in_pad - in_f)))

    tk = _pick_tile(in_pad)
    tn = _pick_tile(out_pad)
    grid = (out_pad // tn, in_pad // tk)   # (N tiles, K tiles); K last.

    out_padded = pl.pallas_call(
        linear_bn_relu_kernel,
        out_shape=jax.ShapeDtypeStruct((B, out_pad), jnp.float32),
        grid_spec=pltpu.PrefetchScalarGridSpec(
            num_scalar_prefetch=0,
            grid=grid,
            in_specs=[
                # x tile: full batch rows, K chunk k.
                pl.BlockSpec((B, tk), lambda j, k: (0, k)),
                # weight tile: K chunk k, N chunk j.
                pl.BlockSpec((tk, tn), lambda j, k: (k, j)),
            ],
            # Output tile constant over k -> resident accumulator-style output.
            out_specs=pl.BlockSpec((B, tn), lambda j, k: (0, j)),
            scratch_shapes=[pltpu.VMEM((B, tn), jnp.float32)],
        ),
        compiler_params=pltpu.CompilerParams(
            dimension_semantics=("parallel", "arbitrary"),
        ),
    )(x, w_prepared)

    if out_pad != out_features:
        out_padded = out_padded[:, :out_features]
    return out_padded


def reference(x, weight):
    y = x @ weight.T
    mean = jnp.mean(y, axis=0, keepdims=True)
    var = jnp.mean((y - mean) ** 2, axis=0, keepdims=True)
    return jnp.maximum((y - mean) / jnp.sqrt(var + EPS), 0.0)


def _run_case(key, B, in_features, out_features):
    kx, kw = jax.random.split(key)
    x = jax.random.normal(kx, (B, in_features), dtype=jnp.float32)
    bound = 1.0 / jnp.sqrt(in_features)
    weight = jax.random.uniform(
        kw, (out_features, in_features), minval=-bound, maxval=bound,
        dtype=jnp.float32)

    w_prep = prepare_weight(weight)          # one-time, off the hot path
    out = linear_bn_relu(x, w_prep, out_features)
    out = jax.block_until_ready(out)

    ref = reference(x, weight)
    assert out.shape == (B, out_features), out.shape
    err = jnp.max(jnp.abs(out - ref))
    assert jnp.allclose(out, ref, atol=2e-4, rtol=2e-4), f"max err {err}"
    return float(err)


if __name__ == "__main__":
    key = jax.random.PRNGKey(0)
    k1, k2 = jax.random.split(key)

    # Small case exercising K/N padding + trimming (in_pad=128, out_pad=128).
    _run_case(k1, B=16, in_features=100, out_features=60)
    # Multi-tile case: in_pad=1024 -> 2 K tiles, out_pad=640 -> 5 N tiles.
    _run_case(k2, B=16, in_features=1000, out_features=600)

    print("KERNEL_OK")
</pallas_src>

<mosaic_0001>
module attributes {stable_mosaic.version = 11 : i64} {
  func.func @linear_bn_relu_kernel(%arg0: i32, %arg1: i32, %arg2: memref<16x128xf32, #tpu.memory_space<vmem>>, %arg3: memref<128x128xf32, #tpu.memory_space<vmem>>, %arg4: memref<16x128xf32, #tpu.memory_space<vmem>>, %arg5: memref<16x128xf32, #tpu.memory_space<vmem>>) attributes {dimension_semantics = [#tpu.dimension_semantics<parallel>, #tpu.dimension_semantics<arbitrary>], iteration_bounds = array<i64: 1, 1>, scalar_prefetch = 0 : i64, scratch_operands = 1 : i64, tpu.core_type = #tpu.core_type<tc>, window_params = [{transform_indices = @transform_0, window_bounds = array<i64: 16, 128>}, {transform_indices = @transform_1, window_bounds = array<i64: 128, 128>}, {transform_indices = @transform_2, window_bounds = array<i64: 16, 128>}]} {
    %c0_i32 = arith.constant 0 : i32
    %0 = arith.cmpi eq, %arg1, %c0_i32 : i32
    %1 = arith.extui %0 : i1 to i32
    %c0_i32_0 = arith.constant 0 : i32
    %2 = arith.cmpi ne, %1, %c0_i32_0 : i32
    scf.if %2 {
      %cst_10 = arith.constant 0.000000e+00 : f32
      %12 = vector.broadcast %cst_10 : f32 to vector<16x128xf32>
      %c0_11 = arith.constant 0 : index
      %c0_12 = arith.constant 0 : index
      %13 = vector.load %arg5[%c0_11, %c0_12] : memref<16x128xf32, #tpu.memory_space<vmem>>, vector<16x128xf32>
      tpu.vector_store %arg5[%c0_11, %c0_12], %12 {strides = array<i32>} : memref<16x128xf32, #tpu.memory_space<vmem>>, vector<16x128xf32>,
    } else {
    }
    %c0 = arith.constant 0 : index
    %c0_1 = arith.constant 0 : index
    %3 = vector.load %arg5[%c0, %c0_1] : memref<16x128xf32, #tpu.memory_space<vmem>>, vector<16x128xf32>
    %c0_2 = arith.constant 0 : index
    %c0_3 = arith.constant 0 : index
    %4 = vector.load %arg2[%c0_2, %c0_3] : memref<16x128xf32, #tpu.memory_space<vmem>>, vector<16x128xf32>
    %c0_4 = arith.constant 0 : index
    %c0_5 = arith.constant 0 : index
    %5 = vector.load %arg3[%c0_4, %c0_5] : memref<128x128xf32, #tpu.memory_space<vmem>>, vector<128x128xf32>
    %cst = arith.constant dense<0.000000e+00> : vector<16x128xf32>
    %6 = tpu.matmul %4, %5, %cst {dimension_numbers = #tpu.dot_dimension_numbers<[1], [0], [0], [1], [0, 0, 1, 1], [], []>} : vector<16x128xf32>, vector<128x128xf32>, vector<16x128xf32> -> vector<16x128xf32>
    %7 = arith.addf %3, %6 : vector<16x128xf32>
    %c0_6 = arith.constant 0 : index
    %c0_7 = arith.constant 0 : index
    %8 = vector.load %arg5[%c0_6, %c0_7] : memref<16x128xf32, #tpu.memory_space<vmem>>, vector<16x128xf32>
    tpu.vector_store %arg5[%c0_6, %c0_7], %7 {strides = array<i32>} : memref<16x128xf32, #tpu.memory_space<vmem>>, vector<16x128xf32>,
    %c0_i32_8 = arith.constant 0 : i32
    %9 = arith.cmpi eq, %arg1, %c0_i32_8 : i32
    %10 = arith.extui %9 : i1 to i32
    %c0_i32_9 = arith.constant 0 : i32
    %11 = arith.cmpi ne, %10, %c0_i32_9 : i32
    scf.if %11 {
      %c0_10 = arith.constant 0 : index
      %c0_11 = arith.constant 0 : index
      %12 = vector.load %arg5[%c0_10, %c0_11] : memref<16x128xf32, #tpu.memory_space<vmem>>, vector<16x128xf32>
      %cst_12 = arith.constant dense<0.000000e+00> : vector<128xf32>
      %13 = vector.multi_reduction <add>, %12, %cst_12 [0] : vector<16x128xf32> to vector<128xf32>
      %14 = vector.shape_cast %13 : vector<128xf32> to vector<1x128xf32>
      %cst_13 = arith.constant 6.250000e-02 : f32
      %15 = vector.broadcast %cst_13 : f32 to vector<1x128xf32>
      %16 = arith.mulf %14, %15 : vector<1x128xf32>
      %17 = vector.broadcast %16 : vector<1x128xf32> to vector<16x128xf32>
      %18 = arith.subf %12, %17 : vector<16x128xf32>
      %19 = arith.mulf %18, %18 : vector<16x128xf32>
      %cst_14 = arith.constant dense<0.000000e+00> : vector<128xf32>
      %20 = vector.multi_reduction <add>, %19, %cst_14 [0] : vector<16x128xf32> to vector<128xf32>
      %21 = vector.shape_cast %20 : vector<128xf32> to vector<1x128xf32>
      %cst_15 = arith.constant 6.250000e-02 : f32
      %22 = vector.broadcast %cst_15 : f32 to vector<1x128xf32>
      %23 = arith.mulf %21, %22 : vector<1x128xf32>
      %cst_16 = arith.constant 9.99999974E-5 : f32
      %24 = vector.broadcast %cst_16 : f32 to vector<1x128xf32>
      %25 = arith.addf %23, %24 : vector<1x128xf32>
      %26 = math.rsqrt %25 : vector<1x128xf32>
      %27 = vector.broadcast %26 : vector<1x128xf32> to vector<16x128xf32>
      %28 = arith.mulf %18, %27 : vector<16x128xf32>
      %cst_17 = arith.constant 0.000000e+00 : f32
      %29 = vector.broadcast %cst_17 : f32 to vector<16x128xf32>
      %30 = arith.maximumf %28, %29 : vector<16x128xf32>
      %c0_18 = arith.constant 0 : index
      %c0_19 = arith.constant 0 : index
      %31 = vector.load %arg4[%c0_18, %c0_19] : memref<16x128xf32, #tpu.memory_space<vmem>>, vector<16x128xf32>
      tpu.vector_store %arg4[%c0_18, %c0_19], %30 {strides = array<i32>} : memref<16x128xf32, #tpu.memory_space<vmem>>, vector<16x128xf32>,
    } else {
    }
    return
  }
  func.func @transform_0(%arg0: i32, %arg1: i32) -> (i32, i32) {
    %c0_i32 = arith.constant 0 : i32
    %c0_i32_0 = arith.constant 0 : i32
    return %c0_i32, %arg1 : i32, i32
  }
  func.func @transform_1(%arg0: i32, %arg1: i32) -> (i32, i32) {
    %c0_i32 = arith.constant 0 : i32
    return %arg1, %arg0 : i32, i32
  }
  func.func @transform_2(%arg0: i32, %arg1: i32) -> (i32, i32) {
    %c0_i32 = arith.constant 0 : i32
    %c0_i32_0 = arith.constant 0 : i32
    return %c0_i32, %arg0 : i32, i32
  }
}

</mosaic_0001>

<bundles_post_ra>
// kernel: tpu_custom_call.1
= control target key start
LH: loop header
LB: loop body
LE: loop exit
PB: predicated region body
PF: predicated region fallthrough
CT: control target
= control target key end

     0   :  { %7 = vsyncpa [#allocation4], 0  ;;  %s425_s0 = inlined_call_operand.hbm [shape: f32[16,128], index: 0, kind: input, shape index: {}]   ;;  %s426_s1 = inlined_call_operand.hbm [shape: f32[128,128], index: 1, kind: input, shape index: {}]   ;;  %s427_s2 = inlined_call_operand.hbm [shape: f32[16,128], index: 2, kind: output, shape index: {}]  }
   0x1   :  { %8 = vsyncpa [#allocation7], 0 }
   0x2   :  { %9 = vsyncpa [#allocation5], 0  ;;  %s360_s9 = smov [#allocation3]   ;;  %s288_s13 = scalar_lea.hbm %s425_s0, 256 }
   0x3   :  { %s15_s10 = sshll.u32 %s360_s9, 4  ;;  %p289_p0 = scmp.ne.s32.totalorder %s425_s0, %s288_s13  ;;  %s16_s10 = int_to_ptr.vmem [resolvable:$true] %s15_s10 }
   0x4   :  { %p292_p1 = scmp.lt.u32.totalorder %s288_s13, %s425_s0 }
   0x6   :  { %p294_p2 = pnand %p292_p1, %p289_p0 }
   0x8   :  { %297 = shalt.err (!%p294_p2)
}
   0x9   :  { %s298_s18 = scalar_lea.vmem %s16_s10, 256  ;;  %p303_p4 = scmp.lt.s32.totalorder %s16_s10, %s16_s10 }
   0xa   :  { %p299_p3 = scmp.ne.s32.totalorder %s16_s10, %s298_s18  ;;  %p304_p5 = scmp.lt.s32.totalorder %s298_s18, %s298_s18 }
   0xc   :  { %p305_p6 = por %p304_p5, %p303_p4 }
   0xe   :  { %p306_p7 = pnand %p305_p6, %p299_p3 }
  0x10   :  { %309 = shalt.err (!%p306_p7)
}
  0x11   :  { %s361_s19 = smov 128   ;;  %s362_s20 = smov 8  }
  0x12   :  { %21 = dma.hbm_to_vmem [thread:$0]  %s425_s0, 256, %s16_s10, [#allocation4], %s361_s19, %s361_s19, %s362_s20  }
  0x13   :  { %s363_s23 = smov [#allocation6]   ;;  %s310_s27 = scalar_lea.hbm %s426_s1, 2048 }
  0x14   :  { %s27_s24 = sshll.u32 %s363_s23, 4  ;;  %p311_p8 = scmp.ne.s32.totalorder %s426_s1, %s310_s27  ;;  %s28_s24 = int_to_ptr.vmem [resolvable:$true] %s27_s24 }
  0x15   :  { %p314_p9 = scmp.lt.u32.totalorder %s310_s27, %s426_s1 }
  0x17   :  { %p316_p10 = pnand %p314_p9, %p311_p8 }
  0x19   :  { %319 = shalt.err (!%p316_p10)
}
  0x1a   :  { %s320_s4 = scalar_lea.vmem %s28_s24, 2048  ;;  %p325_p12 = scmp.lt.s32.totalorder %s28_s24, %s28_s24 }
  0x1b   :  { %p321_p11 = scmp.ne.s32.totalorder %s28_s24, %s320_s4  ;;  %p326_p13 = scmp.lt.s32.totalorder %s320_s4, %s320_s4 }
  0x1d   :  { %p327_p0 = por %p326_p13, %p325_p12 }
  0x1f   :  { %p328_p1 = pnand %p327_p0, %p321_p11 }
  0x21   :  { %331 = shalt.err (!%p328_p1)
}
  0x22   :  { %33 = dma.hbm_to_vmem [thread:$0]  %s426_s1, 2048, %s28_s24, [#allocation7], %s361_s19, %s361_s19, %s362_s20  }
  0x23   :  { %354 = dma.done.wait [#allocation4], 256  }
  0x24   :  { %355 = vsyncadd [#allocation4], 4294967040 }
  0x25   :  { %356 = dma.done.wait [#allocation7], 2048  }
  0x26   :  { %357 = vsyncadd [#allocation7], 4294965248  ;;  %v50_v0 = vld [vmem:[#allocation6] sm:$0xff]  ;;  %v51_v1 = vld [vmem:[#allocation6 + $0x8] sm:$0xff]  ;;  %s364_s1 = smov [#allocation8]  }
  0x27   :  { %v52_v2 = vld [vmem:[#allocation6 + $0x10] sm:$0xff]  ;;  %v249_v3 = vpack.c.bf16 %v51_v1, %v50_v0  ;;  %v53_v4 = vld [vmem:[#allocation6 + $0x18] sm:$0xff]  ;;  %v54_v6 = vld [vmem:[#allocation6 + $0x20] sm:$0xff]  ;;  %s183_s6 = sshll.u32 %s364_s1, 4  ;;  %s184_s6 = int_to_ptr.vmem [resolvable:$true] %s183_s6 }
  0x28   :  { %v253_v5 = vpack.c.bf16 %v53_v4, %v52_v2  ;;  %v55_v7 = vld [vmem:[#allocation6 + $0x28] sm:$0xff]  ;;  %v48_v9 = vld [vmem:[#allocation3] sm:$0xff]  ;;  %v57_v11 = vld [vmem:[#allocation6 + $0x38] sm:$0xff]  ;;  %s332_s7 = scalar_lea.vmem %s184_s6, 256  ;;  %p337_p3 = scmp.lt.s32.totalorder %s184_s6, %s184_s6 }
  0x29   :  { %250 = vmatprep.subr.bf16.mxu0 %v249_v3  ;;  %v257_v8 = vpack.c.bf16 %v55_v7, %v54_v6  ;;  %v56_v10 = vld [vmem:[#allocation6 + $0x30] sm:$0xff]  ;;  %246 = vmatprep.mubr.f32.mxu0 %v48_v9  ;;  %v58_v13 = vld [vmem:[#allocation6 + $0x40] sm:$0xff]  ;;  %v59_v14 = vld [vmem:[#allocation6 + $0x48] sm:$0xff]  ;;  %p333_p2 = scmp.ne.s32.totalorder %s184_s6, %s332_s7  ;;  %p338_p4 = scmp.lt.s32.totalorder %s332_s7, %s332_s7 }
  0x2a   :  { %252 = vmatpush3.bf16.msra.mxu0 %v249_v3  ;;  %v261_v12 = vpack.c.bf16 %v57_v11, %v56_v10  ;;  %v265_v15 = vpack.c.bf16 %v59_v14, %v58_v13  ;;  %v60_v16 = vld [vmem:[#allocation6 + $0x50] sm:$0xff]  ;;  %v61_v17 = vld [vmem:[#allocation6 + $0x58] sm:$0xff]  ;;  %v62_v19 = vld [vmem:[#allocation6 + $0x60] sm:$0xff] }
  0x2b   :  { %254 = vmatprep.subr.bf16.mxu0 %v253_v5  ;;  %v269_v18 = vpack.c.bf16 %v61_v17, %v60_v16  ;;  %v63_v20 = vld [vmem:[#allocation6 + $0x68] sm:$0xff]  ;;  %v64_v22 = vld [vmem:[#allocation6 + $0x70] sm:$0xff]  ;;  %v65_v23 = vld [vmem:[#allocation6 + $0x78] sm:$0xff]  ;;  %p339_p5 = por %p338_p4, %p337_p3 }
  0x2c   :  { %v273_v21 = vpack.c.bf16 %v63_v20, %v62_v19  ;;  %v277_v24 = vpack.c.bf16 %v65_v23, %v64_v22  ;;  %v49_v25 = vld [vmem:[#allocation3 + $0x8] sm:$0xff] }
  0x2d   :  { %p340_p6 = pnand %p339_p5, %p333_p2 }
  0x2e   :  { %256 = vmatpush3.bf16.msra.mxu0 %v253_v5 }
  0x2f   :  { %258 = vmatprep.subr.bf16.mxu0 %v257_v8 }
  0x32   :  { %260 = vmatpush3.bf16.msra.mxu0 %v257_v8 }
  0x33   :  { %262 = vmatprep.subr.bf16.mxu0 %v261_v12 }
  0x36   :  { %264 = vmatpush3.bf16.msra.mxu0 %v261_v12 }
  0x37   :  { %266 = vmatprep.subr.bf16.mxu0 %v265_v15 }
  0x3a   :  { %268 = vmatpush3.bf16.msra.mxu0 %v265_v15 }
  0x3b   :  { %270 = vmatprep.subr.bf16.mxu0 %v269_v18 }
  0x3e   :  { %272 = vmatpush3.bf16.msra.mxu0 %v269_v18 }
  0x3f   :  { %274 = vmatprep.subr.bf16.mxu0 %v273_v21 }
  0x42   :  { %276 = vmatpush3.bf16.msra.mxu0 %v273_v21 }
  0x43   :  { %278 = vmatprep.subr.bf16.mxu0 %v277_v24 }
  0x46   :  { %280 = vmatpush3.bf16.msra.mxu0 %v277_v24 }
  0x49   :  { %247 = vmatmul.mubr.f32.vlgmr.msra.gmra.mrb[0].mxu0 %v49_v25 }
 0x11c   :  { %v248_v26 = vpop.f32.mrb[0].mxu0 }
 0x11d   :  { %v132_v27 = vpop.f32.mrb[1].mxu0 }
 0x11e   :  { %v150_v28 = vadd.f32 %v248_v26, %v132_v27 }
 0x120   :  { %v151_v29 = vrot.slane %v150_v28, 4 }
 0x122   :  { %v152_v30 = vadd.f32 %v151_v29, %v150_v28 }
 0x124   :  { %v153_v31 = vrot.slane %v152_v30, 2 }
 0x126   :  { %v154_v32 = vadd.f32 %v153_v31, %v152_v30 }
 0x128   :  { %v155_v33 = vrot.slane %v154_v32, 1 }
 0x12a   :  { %v156_v34 = vadd.f32 %v155_v33, %v154_v32 }
 0x12c   :  { %v157_v35 = vmul.f32 0.0625, %v156_v34 }
 0x12e   :  { %v158_v36 = vsub.f32 %v132_v27, %v157_v35  ;;  %v159_v37 = vsub.f32 %v248_v26, %v157_v35 }
 0x130   :  { %v160_v38 = vmul.f32 %v158_v36, %v158_v36  ;;  %v161_v39 = vmul.f32 %v159_v37, %v159_v37 }
 0x132   :  { %v162_v40 = vadd.f32 %v161_v39, %v160_v38 }
 0x134   :  { %v163_v41 = vrot.slane %v162_v40, 4 }
 0x136   :  { %v164_v42 = vadd.f32 %v163_v41, %v162_v40 }
 0x138   :  { %v165_v43 = vrot.slane %v164_v42, 2 }
 0x13a   :  { %v166_v44 = vadd.f32 %v165_v43, %v164_v42 }
 0x13c   :  { %v167_v45 = vrot.slane %v166_v44, 1 }
 0x13e   :  { %v168_v46 = vadd.f32 %v167_v45, %v166_v44 }
 0x140   :  { %v169_v47 = vmul.f32 0.0625, %v168_v46 }
 0x142   :  { %v170_v48 = vadd.f32 0.0001, %v169_v47 }
 0x144   :  { %286 = vrsqrt.f32 %v170_v48 }
 0x14e   :  { %v287_v49 = vpop.eup %286 }
 0x14f   :  { %v172_v50 = vmul.f32 %v287_v49, %v158_v36  ;;  %v173_v51 = vmul.f32 %v287_v49, %v159_v37 }
 0x151   :  { %v174_v52 = vmax.f32 %v172_v50, 0.0  ;;  %v175_v53 = vmax.f32 %v173_v51, 0.0 }
 0x153   :  { %176 = vst [vmem:[#allocation8] sm:$0xff] %v174_v52  ;;  %177 = vst [vmem:[#allocation8 + $0x8] sm:$0xff] %v175_v53 }
 0x154   :  { %343 = shalt.err (!%p340_p6)
}
 0x155   :  { %s344_s10 = scalar_lea.hbm %s427_s2, 256 }
 0x156   :  { %p345_p7 = scmp.ne.s32.totalorder %s427_s2, %s344_s10  ;;  %p348_p8 = scmp.lt.u32.totalorder %s344_s10, %s427_s2 }
 0x158   :  { %p350_p9 = pnand %p348_p8, %p345_p7 }
 0x15a   :  { %353 = shalt.err (!%p350_p9)
}
 0x15b   :  { %189 = dma.vmem_to_hbm [thread:$0]  %s184_s6, 256, %s427_s2, [#allocation5], %s361_s19, %s361_s19, %s362_s20  }
 0x15c   :  { %358 = dma.done.wait [#allocation5], 256  }
 0x15d   :  { %359 = vsyncadd [#allocation5], 4294967040 }
 0x15e   :  { %193 = vsyncpa [#allocation4], 1 }
 0x15f   :  { %194 = vsyncpa [#allocation7], 1 }
 0x160   :  { %195 = vsyncpa [#allocation5], 1 }

</bundles_post_ra>
